<compile_context>
chip_gen: v7x
topology: tpu7x:2x2x1
jax: 0.10.0
libtpu: 0.0.40
codegen_flags: <defaults>
</compile_context>

<pallas_src>
import functools

import jax
import jax.numpy as jnp
from jax.experimental import pallas as pl
from jax.experimental.pallas import tpu as pltpu


def _nonlocal_kernel(x_ref, a_ref, b_ref, g_ref, bias_ref, o_ref, acc_ref,
                     *, compute_dtype):
    """Fused non-local block, spatial-last layout.

    Grid: (batch, q-tile, kv-tile); kv is the innermost (reduction) axis.

      x    : (1, C,  Bq)   input tokens (channels on sublanes, spatial on lanes)
      a    : (1, 1,  Bq)   per-query concat-project scalar (theta fold)
      b    : (1, Bkv, 1)   per-kv concat-project scalar    (phi fold)
      g    : (1, C,  Bkv)  folded value projection  (W conv * bn_scale / Nkv)
      bias : (C, 1)        W_b * bn_scale + bn_shift
      out  : (1, C,  Bq) = sum_kv g @ relu(a + b) + bias + x
    """
    kv = pl.program_id(2)

    @pl.when(kv == 0)
    def _():
        acc_ref[...] = jnp.zeros_like(acc_ref)

    # Pairwise "concatenation" map  f^T[j, i] = relu(b[j] + a[i]), built
    # directly in the matmul dtype (bf16 fast path -> no extra cast pass over
    # the (Bkv, Bq) temporary; only the tiny (1, Bq) row is cast).
    a = a_ref[0].astype(compute_dtype)                       # (1, Bq)
    ft = jnp.maximum(b_ref[0] + a, 0.0)                      # (Bkv, Bq)

    # Lane-dense attention matmul; W conv / BN / 1/Nkv already folded into g.
    acc_ref[...] += jnp.dot(g_ref[0], ft, preferred_element_type=jnp.float32)

    @pl.when(kv == pl.num_programs(2) - 1)
    def _():
        x = x_ref[0].astype(jnp.float32)                     # residual in f32
        o_ref[0] = (acc_ref[...] + bias_ref[...] + x).astype(o_ref.dtype)


# --------------------------- plain-JAX glue ---------------------------------

def _conv1x1(x, w, b=None):
    # x: (B, Cin, H, W), w: (Cout, Cin) -- a plain matmul over flattened tokens.
    out = jnp.einsum("bchw,oc->bohw", x, w)
    if b is not None:
        out = out + b[None, :, None, None]
    return out


def _maxpool2x2(x):
    # PyTorch MaxPool2d(2) semantics: floor division (odd trailing row/col dropped).
    B, C, H, W = x.shape
    Hs, Ws = H // 2, W // 2
    x = x[:, :, :Hs * 2, :Ws * 2]
    return x.reshape(B, C, Hs, 2, Ws, 2).max(axis=(3, 5))


# --------------------------- tiling helpers ----------------------------------

def _device_tuning():
    """(q-tile target, vmem request) per TPU generation."""
    try:
        info = pltpu.get_tpu_info()
        vmem = int(getattr(info, "vmem_capacity_bytes", 0) or 0)
    except Exception:
        vmem = 0
    if vmem >= 96 * 1024 * 1024:          # v5e / v6e: 128 MiB VMEM
        return 1024, 64 * 1024 * 1024
    return 512, 40 * 1024 * 1024          # v7x (64 MiB) or unknown


def _pick_block_q(nq, batch, target):
    """128-multiple q tile <= target minimizing padding; >= 2 grid cells so
    both v7x TensorCores get work when possible."""
    target = max(128, (target // 128) * 128)
    best_bq, best_tot = 128, ((nq + 127) // 128) * 128
    for bq in range(128, target + 1, 128):
        tot = -(-nq // bq) * bq
        if tot < best_tot or (tot == best_tot and bq > best_bq):
            best_bq, best_tot = bq, tot
    bq, nq_pad = best_bq, best_tot
    if batch * (nq_pad // bq) < 2 and bq > 128:       # megacore occupancy
        bq = max(128, (bq // 2) // 128 * 128)
        nq_pad = -(-nq // bq) * bq
    return bq, nq_pad


def _pick_block_kv(nkv, max_kv_block):
    """Full-kv single tile when it fits; otherwise 128-multiple kv tiles
    accumulated through the third ('arbitrary') grid axis."""
    if nkv <= max_kv_block:
        return nkv, nkv, 1
    bkv = max(128, (max_kv_block // 128) * 128)
    nkv_pad = -(-nkv // bkv) * bkv
    return bkv, nkv_pad, nkv_pad // bkv


# --------------------------- forward wrapper ---------------------------------

def nonlocal_block_forward(x_nchw, params, *, use_bf16_matmul=True,
                           max_kv_block=2048):
    B, C, H, W = x_nchw.shape
    Ci = params["theta_w"].shape[0]
    Hs, Ws = H // 2, W // 2
    Nq, Nkv = H * W, Hs * Ws
    f32 = jnp.float32
    op_dtype = jnp.bfloat16 if use_bf16_matmul else f32

    # ---------------- weight folding (tiny, plain JAX) ----------------
    cp_w = params["cp_w"].reshape(2 * Ci)
    wt, wp = cp_w[:Ci], cp_w[Ci:]                       # concat_project halves

    # theta branch + concat_project fold into a single 1-channel 1x1 conv.
    v_row = (params["theta_w"].T @ wt).reshape(1, C)
    theta_bias = jnp.dot(params["theta_b"], wt).reshape(1)

    # eval-mode BatchNorm folded into per-channel scale / shift.
    eps = 1e-5
    bn_scale = params["bn_gamma"] / jnp.sqrt(params["bn_rv"] + eps)
    bn_shift = params["bn_beta"] - params["bn_rm"] * bn_scale
    bias_eff = (params["W_b"] * bn_scale + bn_shift).reshape(C, 1).astype(f32)

    # ------- ONE fused 1x1 conv over x for g / phi / theta-fold branches -----
    w_all = jnp.concatenate([params["g_w"], params["phi_w"], v_row], axis=0)
    b_all = jnp.concatenate([params["g_b"], params["phi_b"], theta_bias], axis=0)
    feats = _conv1x1(x_nchw, w_all, b_all)              # (B, 2Ci+1, H, W)
    g_feat = _maxpool2x2(feats[:, :Ci]).reshape(B, Ci, Nkv)
    phi_feat = _maxpool2x2(feats[:, Ci:2 * Ci]).reshape(B, Ci, Nkv)
    a_sl = feats[:, 2 * Ci:].reshape(B, 1, Nq).astype(f32)   # per-query scalar

    # phi branch folds into a per-kv scalar.
    b_eff = jnp.einsum("bcn,c->bn", phi_feat, wp).reshape(B, Nkv, 1)

    # value branch with the W 1x1 conv, BN scale and 1/Nkv folded in.
    g_eff = jnp.einsum("oc,bcn->bon", params["W_w"], g_feat)
    g_eff = g_eff * (bn_scale / float(Nkv))[None, :, None]

    # Hoisted casts: matmul operands live in HBM in the matmul dtype
    # (bf16 fast path) -> no per-q-tile cast pass, half the g/b DMA traffic.
    g_eff = g_eff.astype(op_dtype)
    b_eff = b_eff.astype(op_dtype)

    # spatial-last tokens: a pure reshape of NCHW (no transposes anywhere).
    x_sl = x_nchw.reshape(B, C, Nq)

    # ---------------- tiling / padding ----------------
    q_target, vmem_limit = _device_tuning()
    block_q, nq_pad = _pick_block_q(Nq, B, q_target)
    block_kv, nkv_pad, n_kv_tiles = _pick_block_kv(Nkv, max_kv_block)
    n_q_tiles = nq_pad // block_q

    if nq_pad != Nq:      # lane-dense q tiles: unmasked stores, no giant tile
        x_sl = jnp.pad(x_sl, ((0, 0), (0, 0), (0, nq_pad - Nq)))
        a_sl = jnp.pad(a_sl, ((0, 0), (0, 0), (0, nq_pad - Nq)))
    if nkv_pad != Nkv:    # zero g columns -> padded kv contributes nothing
        g_eff = jnp.pad(g_eff, ((0, 0), (0, 0), (0, nkv_pad - Nkv)))
        b_eff = jnp.pad(b_eff, ((0, 0), (0, nkv_pad - Nkv), (0, 0)))

    # batch-resident operands change only at batch boundaries when kv is a
    # single tile -> single-buffer them (halves their VMEM footprint).
    res_bufs = 1 if n_kv_tiles == 1 else 2

    kernel = functools.partial(_nonlocal_kernel, compute_dtype=op_dtype)

    itx = x_nchw.dtype.itemsize
    itg = jnp.dtype(op_dtype).itemsize
    flops = B * (2 * C * nkv_pad * nq_pad + 2 * nkv_pad * nq_pad + 3 * C * nq_pad)
    bytes_accessed = (2 * B * C * nq_pad * itx + B * C * nkv_pad * itg
                      + B * nkv_pad * itg + 4 * B * nq_pad + 8 * C)

    def _call(single_buffer):
        def spec(shape, imap, bufs=2):
            if single_buffer and bufs == 1:
                return pl.BlockSpec(shape, imap, pipeline_mode=pl.Buffered(1))
            return pl.BlockSpec(shape, imap)

        return pl.pallas_call(
            kernel,
            out_shape=jax.ShapeDtypeStruct((B, C, nq_pad), x_nchw.dtype),
            grid_spec=pltpu.PrefetchScalarGridSpec(
                num_scalar_prefetch=0,
                grid=(B, n_q_tiles, n_kv_tiles),
                in_specs=[
                    spec((1, C, block_q), lambda b, q, k: (b, 0, q)),             # x
                    spec((1, 1, block_q), lambda b, q, k: (b, 0, q)),             # a
                    spec((1, block_kv, 1), lambda b, q, k: (b, k, 0), res_bufs),  # b
                    spec((1, C, block_kv), lambda b, q, k: (b, 0, k), res_bufs),  # g
                    spec((C, 1), lambda b, q, k: (0, 0), 1),                      # bias
                ],
                out_specs=pl.BlockSpec((1, C, block_q), lambda b, q, k: (b, 0, q)),
                scratch_shapes=[pltpu.VMEM((C, block_q), jnp.float32)],
            ),
            compiler_params=pltpu.CompilerParams(
                dimension_semantics=("parallel", "parallel", "arbitrary"),
                vmem_limit_bytes=vmem_limit),
            cost_estimate=pl.CostEstimate(
                flops=flops, transcendentals=0, bytes_accessed=bytes_accessed),
        )(x_sl, a_sl, b_eff, g_eff, bias_eff)

    try:
        out_sl = _call(True)
    except Exception:
        # pl.Buffered(1) not accepted on this build -> default double buffering.
        out_sl = _call(False)

    # back to NCHW (slice away q padding; pure reshape).
    return out_sl[:, :, :Nq].reshape(B, C, H, W)


# --------------------------- reference & params ------------------------------

def ref_forward(x, params):
    """Pure-JAX re-implementation of the PyTorch forward (eval-mode BN)."""
    B, C, H, W = x.shape
    Ci = params["theta_w"].shape[0]

    g_x = _maxpool2x2(_conv1x1(x, params["g_w"], params["g_b"]))
    g_x = g_x.reshape(B, Ci, -1).transpose(0, 2, 1)                  # (B, Nkv, Ci)

    theta_x = _conv1x1(x, params["theta_w"], params["theta_b"])
    theta_x = theta_x.reshape(B, Ci, -1, 1)                          # (B, Ci, Nq, 1)
    phi_x = _maxpool2x2(_conv1x1(x, params["phi_w"], params["phi_b"]))
    phi_x = phi_x.reshape(B, Ci, 1, -1)                              # (B, Ci, 1, Nkv)

    h, w = theta_x.shape[2], phi_x.shape[3]
    theta_r = jnp.tile(theta_x, (1, 1, 1, w))
    phi_r = jnp.tile(phi_x, (1, 1, h, 1))
    concat = jnp.concatenate([theta_r, phi_r], axis=1)               # (B, 2Ci, Nq, Nkv)

    f = jnp.einsum("bchw,oc->bohw", concat, params["cp_w"].reshape(1, 2 * Ci))
    f = jax.nn.relu(f).reshape(B, h, w)
    N = f.shape[-1]
    f_div_C = f / N

    y = jnp.matmul(f_div_C, g_x)                                     # (B, Nq, Ci)
    y = y.transpose(0, 2, 1).reshape(B, Ci, H, W)

    W_y = _conv1x1(y, params["W_w"], params["W_b"])
    eps = 1e-5
    scale = params["bn_gamma"] / jnp.sqrt(params["bn_rv"] + eps)
    W_y = ((W_y - params["bn_rm"][None, :, None, None])
           * scale[None, :, None, None]
           + params["bn_beta"][None, :, None, None])
    return W_y + x


def make_params(key, in_channels):
    C = in_channels
    Ci = max(C // 2, 1)
    ks = jax.random.split(key, 9)
    return {
        "g_w": 0.1 * jax.random.normal(ks[0], (Ci, C), jnp.float32),
        "g_b": 0.1 * jax.random.normal(ks[1], (Ci,), jnp.float32),
        "theta_w": 0.1 * jax.random.normal(ks[2], (Ci, C), jnp.float32),
        "theta_b": 0.1 * jax.random.normal(ks[3], (Ci,), jnp.float32),
        "phi_w": 0.1 * jax.random.normal(ks[4], (Ci, C), jnp.float32),
        "phi_b": 0.1 * jax.random.normal(ks[5], (Ci,), jnp.float32),
        "cp_w": 0.1 * jax.random.normal(ks[6], (1, 2 * Ci, 1, 1), jnp.float32),
        "W_w": 0.1 * jax.random.normal(ks[7], (C, Ci), jnp.float32),
        "W_b": 0.1 * jax.random.normal(ks[8], (C,), jnp.float32),
        # BatchNorm2d: per the module __init__, gamma and beta are zero-init.
        "bn_gamma": jnp.zeros((C,), jnp.float32),
        "bn_beta": jnp.zeros((C,), jnp.float32),
        "bn_rm": jnp.zeros((C,), jnp.float32),
        "bn_rv": jnp.ones((C,), jnp.float32),
    }


if __name__ == "__main__":
    key = jax.random.PRNGKey(0)
    k_x, k_p, k_x2, k_p2 = jax.random.split(key, 4)

    # 1) faithful module init (BN gamma = 0  =>  z == x), default bf16 path.
    B, C, H, W = 2, 4, 16, 16
    x = jax.random.normal(k_x, (B, C, H, W), jnp.float32)
    params = make_params(k_p, C)
    z = jax.block_until_ready(nonlocal_block_forward(x, params))
    assert jnp.allclose(z, ref_forward(x, params), atol=1e-5, rtol=1e-5), \
        "mismatch (zero-BN init)"

    # Non-degenerate BN affine so the attention path is exercised.
    params_nz = dict(params)
    params_nz["bn_gamma"] = jnp.ones((C,), jnp.float32)
    params_nz["bn_beta"] = 0.1 * jnp.ones((C,), jnp.float32)
    z_ref_nz = ref_forward(x, params_nz)

    # 2) f32 matmul path -> tight tolerance.
    z2 = jax.block_until_ready(
        nonlocal_block_forward(x, params_nz, use_bf16_matmul=False))
    assert jnp.allclose(z2, z_ref_nz, atol=1e-4, rtol=1e-4), "mismatch (f32 path)"

    # 3) bf16 MXU path (the default on every generation) -> looser tolerance.
    z3 = jax.block_until_ready(
        nonlocal_block_forward(x, params_nz, use_bf16_matmul=True))
    assert jnp.allclose(z3, z_ref_nz, atol=5e-3, rtol=5e-3), "mismatch (bf16 path)"

    # 4) ragged spatial: Nq not a 128-multiple (q-padding path) + odd pooling.
    Bo, Co, Ho, Wo = 1, 4, 9, 13
    xo = jax.random.normal(k_x2, (Bo, Co, Ho, Wo), jnp.float32)
    params_o = make_params(k_p2, Co)
    params_o["bn_gamma"] = jnp.ones((Co,), jnp.float32)
    params_o["bn_beta"] = 0.05 * jnp.ones((Co,), jnp.float32)
    z4 = jax.block_until_ready(
        nonlocal_block_forward(xo, params_o, use_bf16_matmul=False))
    assert jnp.allclose(z4, ref_forward(xo, params_o), atol=1e-4, rtol=1e-4), \
        "mismatch (padded-Nq path)"

    # 5) kv-tiled accumulator path (force small max_kv_block -> 2 kv tiles).
    Bk, Ck, Hk, Wk = 2, 8, 32, 32
    xk = jax.random.normal(jax.random.fold_in(k_x, 7), (Bk, Ck, Hk, Wk), jnp.float32)
    params_k = make_params(jax.random.fold_in(k_p, 7), Ck)
    params_k["bn_gamma"] = jnp.ones((Ck,), jnp.float32)
    params_k["bn_beta"] = 0.1 * jnp.ones((Ck,), jnp.float32)
    z5 = jax.block_until_ready(
        nonlocal_block_forward(xk, params_k, use_bf16_matmul=False,
                               max_kv_block=128))
    assert jnp.allclose(z5, ref_forward(xk, params_k), atol=1e-4, rtol=1e-4), \
        "mismatch (kv-tiled path)"

    print("KERNEL_OK")
</pallas_src>

<mosaic_0001>
module attributes {stable_mosaic.version = 11 : i64} {
  func.func @_nonlocal_kernel(%arg0: i32, %arg1: i32, %arg2: i32, %arg3: memref<1x4x256xf32, #tpu.memory_space<vmem>>, %arg4: memref<1x1x256xf32, #tpu.memory_space<vmem>>, %arg5: memref<1x64x1xbf16, #tpu.memory_space<vmem>>, %arg6: memref<1x4x64xbf16, #tpu.memory_space<vmem>>, %arg7: memref<4x1xf32, #tpu.memory_space<vmem>>, %arg8: memref<1x4x256xf32, #tpu.memory_space<vmem>>, %arg9: memref<4x256xf32, #tpu.memory_space<vmem>>) attributes {dimension_semantics = [#tpu.dimension_semantics<parallel>, #tpu.dimension_semantics<parallel>, #tpu.dimension_semantics<arbitrary>], iteration_bounds = array<i64: 2, 1, 1>, scalar_prefetch = 0 : i64, scratch_operands = 1 : i64, tpu.core_type = #tpu.core_type<tc>, window_params = [{transform_indices = @transform_0, window_bounds = array<i64: 1, 4, 256>}, {transform_indices = @transform_1, window_bounds = array<i64: 1, 1, 256>}, {pipeline_mode = #tpu.pipeline_mode<synchronous>, transform_indices = @transform_2, window_bounds = array<i64: 1, 64, 1>}, {pipeline_mode = #tpu.pipeline_mode<synchronous>, transform_indices = @transform_3, window_bounds = array<i64: 1, 4, 64>}, {pipeline_mode = #tpu.pipeline_mode<synchronous>, transform_indices = @transform_4, window_bounds = array<i64: 4, 1>}, {transform_indices = @transform_5, window_bounds = array<i64: 1, 4, 256>}]} {
    %c0_i32 = arith.constant 0 : i32
    %0 = arith.cmpi eq, %arg2, %c0_i32 : i32
    %1 = arith.extui %0 : i1 to i32
    %c0_i32_0 = arith.constant 0 : i32
    %2 = arith.cmpi ne, %1, %c0_i32_0 : i32
    scf.if %2 {
      %cst_16 = arith.constant 0.000000e+00 : f32
      %22 = vector.broadcast %cst_16 : f32 to vector<4x256xf32>
      %c0_17 = arith.constant 0 : index
      %c0_18 = arith.constant 0 : index
      %23 = vector.load %arg9[%c0_17, %c0_18] : memref<4x256xf32, #tpu.memory_space<vmem>>, vector<4x256xf32>
      tpu.vector_store %arg9[%c0_17, %c0_18], %22 {strides = array<i32>} : memref<4x256xf32, #tpu.memory_space<vmem>>, vector<4x256xf32>,
    } else {
    }
    %c0 = arith.constant 0 : index
    %c0_1 = arith.constant 0 : index
    %c0_2 = arith.constant 0 : index
    %3 = vector.load %arg4[%c0, %c0_1, %c0_2] : memref<1x1x256xf32, #tpu.memory_space<vmem>>, vector<1x1x256xf32>
    %4 = vector.shape_cast %3 : vector<1x1x256xf32> to vector<1x256xf32>
    %5 = arith.truncf %4 : vector<1x256xf32> to vector<1x256xbf16>
    %c0_3 = arith.constant 0 : index
    %c0_4 = arith.constant 0 : index
    %c0_5 = arith.constant 0 : index
    %6 = vector.load %arg5[%c0_3, %c0_4, %c0_5] : memref<1x64x1xbf16, #tpu.memory_space<vmem>>, vector<1x64x1xbf16>
    %7 = vector.shape_cast %6 : vector<1x64x1xbf16> to vector<64x1xbf16>
    %8 = vector.broadcast %7 : vector<64x1xbf16> to vector<64x256xbf16>
    %9 = vector.broadcast %5 : vector<1x256xbf16> to vector<64x256xbf16>
    %10 = arith.addf %8, %9 : vector<64x256xbf16>
    %cst = arith.constant 0.000000e+00 : bf16
    %11 = vector.broadcast %cst : bf16 to vector<64x256xbf16>
    %12 = arith.maximumf %10, %11 : vector<64x256xbf16>
    %c0_6 = arith.constant 0 : index
    %c0_7 = arith.constant 0 : index
    %13 = vector.load %arg9[%c0_6, %c0_7] : memref<4x256xf32, #tpu.memory_space<vmem>>, vector<4x256xf32>
    %c0_8 = arith.constant 0 : index
    %c0_9 = arith.constant 0 : index
    %c0_10 = arith.constant 0 : index
    %14 = vector.load %arg6[%c0_8, %c0_9, %c0_10] : memref<1x4x64xbf16, #tpu.memory_space<vmem>>, vector<1x4x64xbf16>
    %15 = vector.shape_cast %14 : vector<1x4x64xbf16> to vector<4x64xbf16>
    %cst_11 = arith.constant dense<0.000000e+00> : vector<4x256xf32>
    %16 = tpu.matmul %15, %12, %cst_11 {dimension_numbers = #tpu.dot_dimension_numbers<[1], [0], [0], [1], [0, 0, 1, 1], [], []>} : vector<4x64xbf16>, vector<64x256xbf16>, vector<4x256xf32> -> vector<4x256xf32>
    %17 = arith.addf %13, %16 : vector<4x256xf32>
    %c0_12 = arith.constant 0 : index
    %c0_13 = arith.constant 0 : index
    %18 = vector.load %arg9[%c0_12, %c0_13] : memref<4x256xf32, #tpu.memory_space<vmem>>, vector<4x256xf32>
    tpu.vector_store %arg9[%c0_12, %c0_13], %17 {strides = array<i32>} : memref<4x256xf32, #tpu.memory_space<vmem>>, vector<4x256xf32>,
    %c0_i32_14 = arith.constant 0 : i32
    %19 = arith.cmpi eq, %arg2, %c0_i32_14 : i32
    %20 = arith.extui %19 : i1 to i32
    %c0_i32_15 = arith.constant 0 : i32
    %21 = arith.cmpi ne, %20, %c0_i32_15 : i32
    scf.if %21 {
      %c0_16 = arith.constant 0 : index
      %c0_17 = arith.constant 0 : index
      %c0_18 = arith.constant 0 : index
      %22 = vector.load %arg3[%c0_16, %c0_17, %c0_18] : memref<1x4x256xf32, #tpu.memory_space<vmem>>, vector<1x4x256xf32>
      %23 = vector.shape_cast %22 : vector<1x4x256xf32> to vector<4x256xf32>
      %c0_19 = arith.constant 0 : index
      %c0_20 = arith.constant 0 : index
      %24 = vector.load %arg9[%c0_19, %c0_20] : memref<4x256xf32, #tpu.memory_space<vmem>>, vector<4x256xf32>
      %c0_21 = arith.constant 0 : index
      %c0_22 = arith.constant 0 : index
      %25 = vector.load %arg7[%c0_21, %c0_22] : memref<4x1xf32, #tpu.memory_space<vmem>>, vector<4x1xf32>
      %26 = vector.broadcast %25 : vector<4x1xf32> to vector<4x256xf32>
      %27 = arith.addf %24, %26 : vector<4x256xf32>
      %28 = arith.addf %27, %23 : vector<4x256xf32>
      %c0_23 = arith.constant 0 : index
      %c0_24 = arith.constant 0 : index
      %c0_25 = arith.constant 0 : index
      %29 = vector.load %arg8[%c0_23, %c0_24, %c0_25] : memref<1x4x256xf32, #tpu.memory_space<vmem>>, vector<1x4x256xf32>
      %30 = vector.shape_cast %29 : vector<1x4x256xf32> to vector<4x256xf32>
      %31 = vector.shape_cast %28 : vector<4x256xf32> to vector<1x4x256xf32>
      tpu.vector_store %arg8[%c0_23, %c0_24, %c0_25], %31 {strides = array<i32>} : memref<1x4x256xf32, #tpu.memory_space<vmem>>, vector<1x4x256xf32>,
    } else {
    }
    return
  }
  func.func @transform_0(%arg0: i32, %arg1: i32, %arg2: i32) -> (i32, i32, i32) {
    %c0_i32 = arith.constant 0 : i32
    %c0_i32_0 = arith.constant 0 : i32
    return %arg0, %c0_i32, %arg1 : i32, i32, i32
  }
  func.func @transform_1(%arg0: i32, %arg1: i32, %arg2: i32) -> (i32, i32, i32) {
    %c0_i32 = arith.constant 0 : i32
    %c0_i32_0 = arith.constant 0 : i32
    return %arg0, %c0_i32, %arg1 : i32, i32, i32
  }
  func.func @transform_2(%arg0: i32, %arg1: i32, %arg2: i32) -> (i32, i32, i32) {
    %c0_i32 = arith.constant 0 : i32
    %c0_i32_0 = arith.constant 0 : i32
    return %arg0, %arg2, %c0_i32 : i32, i32, i32
  }
  func.func @transform_3(%arg0: i32, %arg1: i32, %arg2: i32) -> (i32, i32, i32) {
    %c0_i32 = arith.constant 0 : i32
    %c0_i32_0 = arith.constant 0 : i32
    return %arg0, %c0_i32, %arg2 : i32, i32, i32
  }
  func.func @transform_4(%arg0: i32, %arg1: i32, %arg2: i32) -> (i32, i32) {
    %c0_i32 = arith.constant 0 : i32
    %c0_i32_0 = arith.constant 0 : i32
    %c0_i32_1 = arith.constant 0 : i32
    return %c0_i32, %c0_i32_0 : i32, i32
  }
  func.func @transform_5(%arg0: i32, %arg1: i32, %arg2: i32) -> (i32, i32, i32) {
    %c0_i32 = arith.constant 0 : i32
    %c0_i32_0 = arith.constant 0 : i32
    return %arg0, %c0_i32, %arg1 : i32, i32, i32
  }
}

module attributes {stable_mosaic.version = 11 : i64} {
  func.func @_nonlocal_kernel(%arg0: i32, %arg1: i32, %arg2: i32, %arg3: memref<1x4x256xf32, #tpu.memory_space<vmem>>, %arg4: memref<1x1x256xf32, #tpu.memory_space<vmem>>, %arg5: memref<1x64x1xbf16, #tpu.memory_space<vmem>>, %arg6: memref<1x4x64xbf16, #tpu.memory_space<vmem>>, %arg7: memref<4x1xf32, #tpu.memory_space<vmem>>, %arg8: memref<1x4x256xf32, #tpu.memory_space<vmem>>, %arg9: memref<4x256xf32, #tpu.memory_space<vmem>>) attributes {dimension_semantics = [#tpu.dimension_semantics<parallel>, #tpu.dimension_semantics<parallel>, #tpu.dimension_semantics<arbitrary>], iteration_bounds = array<i64: 2, 1, 1>, scalar_prefetch = 0 : i64, scratch_operands = 1 : i64, tpu.core_type = #tpu.core_type<tc>, window_params = [{transform_indices = @transform_0, window_bounds = array<i64: 1, 4, 256>}, {transform_indices = @transform_1, window_bounds = array<i64: 1, 1, 256>}, {transform_indices = @transform_2, window_bounds = array<i64: 1, 64, 1>}, {transform_indices = @transform_3, window_bounds = array<i64: 1, 4, 64>}, {pipeline_mode = #tpu.pipeline_mode<synchronous>, transform_indices = @transform_4, window_bounds = array<i64: 4, 1>}, {transform_indices = @transform_5, window_bounds = array<i64: 1, 4, 256>}]} {
    %c0_i32 = arith.constant 0 : i32
    %0 = arith.cmpi eq, %arg2, %c0_i32 : i32
    %1 = arith.extui %0 : i1 to i32
    %c0_i32_0 = arith.constant 0 : i32
    %2 = arith.cmpi ne, %1, %c0_i32_0 : i32
    scf.if %2 {
      %cst_16 = arith.constant 0.000000e+00 : f32
      %22 = vector.broadcast %cst_16 : f32 to vector<4x256xf32>
      %c0_17 = arith.constant 0 : index
      %c0_18 = arith.constant 0 : index
      %23 = vector.load %arg9[%c0_17, %c0_18] : memref<4x256xf32, #tpu.memory_space<vmem>>, vector<4x256xf32>
      tpu.vector_store %arg9[%c0_17, %c0_18], %22 {strides = array<i32>} : memref<4x256xf32, #tpu.memory_space<vmem>>, vector<4x256xf32>,
    } else {
    }
    %c0 = arith.constant 0 : index
    %c0_1 = arith.constant 0 : index
    %c0_2 = arith.constant 0 : index
    %3 = vector.load %arg4[%c0, %c0_1, %c0_2] : memref<1x1x256xf32, #tpu.memory_space<vmem>>, vector<1x1x256xf32>
    %4 = vector.shape_cast %3 : vector<1x1x256xf32> to vector<1x256xf32>
    %5 = arith.truncf %4 : vector<1x256xf32> to vector<1x256xbf16>
    %c0_3 = arith.constant 0 : index
    %c0_4 = arith.constant 0 : index
    %c0_5 = arith.constant 0 : index
    %6 = vector.load %arg5[%c0_3, %c0_4, %c0_5] : memref<1x64x1xbf16, #tpu.memory_space<vmem>>, vector<1x64x1xbf16>
    %7 = vector.shape_cast %6 : vector<1x64x1xbf16> to vector<64x1xbf16>
    %8 = vector.broadcast %7 : vector<64x1xbf16> to vector<64x256xbf16>
    %9 = vector.broadcast %5 : vector<1x256xbf16> to vector<64x256xbf16>
    %10 = arith.addf %8, %9 : vector<64x256xbf16>
    %cst = arith.constant 0.000000e+00 : bf16
    %11 = vector.broadcast %cst : bf16 to vector<64x256xbf16>
    %12 = arith.maximumf %10, %11 : vector<64x256xbf16>
    %c0_6 = arith.constant 0 : index
    %c0_7 = arith.constant 0 : index
    %13 = vector.load %arg9[%c0_6, %c0_7] : memref<4x256xf32, #tpu.memory_space<vmem>>, vector<4x256xf32>
    %c0_8 = arith.constant 0 : index
    %c0_9 = arith.constant 0 : index
    %c0_10 = arith.constant 0 : index
    %14 = vector.load %arg6[%c0_8, %c0_9, %c0_10] : memref<1x4x64xbf16, #tpu.memory_space<vmem>>, vector<1x4x64xbf16>
    %15 = vector.shape_cast %14 : vector<1x4x64xbf16> to vector<4x64xbf16>
    %cst_11 = arith.constant dense<0.000000e+00> : vector<4x256xf32>
    %16 = tpu.matmul %15, %12, %cst_11 {dimension_numbers = #tpu.dot_dimension_numbers<[1], [0], [0], [1], [0, 0, 1, 1], [], []>} : vector<4x64xbf16>, vector<64x256xbf16>, vector<4x256xf32> -> vector<4x256xf32>
    %17 = arith.addf %13, %16 : vector<4x256xf32>
    %c0_12 = arith.constant 0 : index
    %c0_13 = arith.constant 0 : index
    %18 = vector.load %arg9[%c0_12, %c0_13] : memref<4x256xf32, #tpu.memory_space<vmem>>, vector<4x256xf32>
    tpu.vector_store %arg9[%c0_12, %c0_13], %17 {strides = array<i32>} : memref<4x256xf32, #tpu.memory_space<vmem>>, vector<4x256xf32>,
    %c0_i32_14 = arith.constant 0 : i32
    %19 = arith.cmpi eq, %arg2, %c0_i32_14 : i32
    %20 = arith.extui %19 : i1 to i32
    %c0_i32_15 = arith.constant 0 : i32
    %21 = arith.cmpi ne, %20, %c0_i32_15 : i32
    scf.if %21 {
      %c0_16 = arith.constant 0 : index
      %c0_17 = arith.constant 0 : index
      %c0_18 = arith.constant 0 : index
      %22 = vector.load %arg3[%c0_16, %c0_17, %c0_18] : memref<1x4x256xf32, #tpu.memory_space<vmem>>, vector<1x4x256xf32>
      %23 = vector.shape_cast %22 : vector<1x4x256xf32> to vector<4x256xf32>
      %c0_19 = arith.constant 0 : index
      %c0_20 = arith.constant 0 : index
      %24 = vector.load %arg9[%c0_19, %c0_20] : memref<4x256xf32, #tpu.memory_space<vmem>>, vector<4x256xf32>
      %c0_21 = arith.constant 0 : index
      %c0_22 = arith.constant 0 : index
      %25 = vector.load %arg7[%c0_21, %c0_22] : memref<4x1xf32, #tpu.memory_space<vmem>>, vector<4x1xf32>
      %26 = vector.broadcast %25 : vector<4x1xf32> to vector<4x256xf32>
      %27 = arith.addf %24, %26 : vector<4x256xf32>
      %28 = arith.addf %27, %23 : vector<4x256xf32>
      %c0_23 = arith.constant 0 : index
      %c0_24 = arith.constant 0 : index
      %c0_25 = arith.constant 0 : index
      %29 = vector.load %arg8[%c0_23, %c0_24, %c0_25] : memref<1x4x256xf32, #tpu.memory_space<vmem>>, vector<1x4x256xf32>
      %30 = vector.shape_cast %29 : vector<1x4x256xf32> to vector<4x256xf32>
      %31 = vector.shape_cast %28 : vector<4x256xf32> to vector<1x4x256xf32>
      tpu.vector_store %arg8[%c0_23, %c0_24, %c0_25], %31 {strides = array<i32>} : memref<1x4x256xf32, #tpu.memory_space<vmem>>, vector<1x4x256xf32>,
    } else {
    }
    return
  }
  func.func @transform_0(%arg0: i32, %arg1: i32, %arg2: i32) -> (i32, i32, i32) {
    %c0_i32 = arith.constant 0 : i32
    %c0_i32_0 = arith.constant 0 : i32
    return %arg0, %c0_i32, %arg1 : i32, i32, i32
  }
  func.func @transform_1(%arg0: i32, %arg1: i32, %arg2: i32) -> (i32, i32, i32) {
    %c0_i32 = arith.constant 0 : i32
    %c0_i32_0 = arith.constant 0 : i32
    return %arg0, %c0_i32, %arg1 : i32, i32, i32
  }
  func.func @transform_2(%arg0: i32, %arg1: i32, %arg2: i32) -> (i32, i32, i32) {
    %c0_i32 = arith.constant 0 : i32
    %c0_i32_0 = arith.constant 0 : i32
    return %arg0, %arg2, %c0_i32 : i32, i32, i32
  }
  func.func @transform_3(%arg0: i32, %arg1: i32, %arg2: i32) -> (i32, i32, i32) {
    %c0_i32 = arith.constant 0 : i32
    %c0_i32_0 = arith.constant 0 : i32
    return %arg0, %c0_i32, %arg2 : i32, i32, i32
  }
  func.func @transform_4(%arg0: i32, %arg1: i32, %arg2: i32) -> (i32, i32) {
    %c0_i32 = arith.constant 0 : i32
    %c0_i32_0 = arith.constant 0 : i32
    %c0_i32_1 = arith.constant 0 : i32
    return %c0_i32, %c0_i32_0 : i32, i32
  }
  func.func @transform_5(%arg0: i32, %arg1: i32, %arg2: i32) -> (i32, i32, i32) {
    %c0_i32 = arith.constant 0 : i32
    %c0_i32_0 = arith.constant 0 : i32
    return %arg0, %c0_i32, %arg1 : i32, i32, i32
  }
}

</mosaic_0001>

<bundles_post_ra>
// kernel: tpu_custom_call.1
= control target key start
LH: loop header
LB: loop body
LE: loop exit
PB: predicated region body
PF: predicated region fallthrough
CT: control target
= control target key end

     0   :  { %10 = vsyncpa [#allocation4], 0  ;;  %s1139_s0 = inlined_call_operand.vmem [shape: f32[2,4,256], index: 0, kind: input, shape index: {}]   ;;  %s1140_s1 = inlined_call_operand.vmem [shape: f32[2,1,256], index: 1, kind: input, shape index: {}]   ;;  %s1141_s2 = inlined_call_operand.vmem [shape: bf16[2,64,1], index: 2, kind: input, shape index: {}]   ;;  %s1142_s3 = inlined_call_operand.vmem [shape: bf16[2,4,64], index: 3, kind: input, shape index: {}]   ;;  %s1143_s4 = inlined_call_operand.vmem [shape: f32[4,1], index: 4, kind: input, shape index: {}]   ;;  %s1144_s5 = inlined_call_operand.hbm [shape: f32[2,4,256], index: 5, kind: output, shape index: {}]  }
   0x1   :  { %12 = vsyncpa [#allocation4 + $0x1], 0  ;;  %s984_s18 = smov 0   ;;  %s986_s19 = smov 0  }
   0x2   :  { %s988_s20 = smov 0   ;;  %s990_s21 = smov 0  }
   0x3   :  { %s992_s22 = smov 0   ;;  %s994_s23 = smov 0  }
   0x4 LB: > { %s782_s24 = sadd.s32 4294967295, %s949_s23   ;;  %s783_s25 = sadd.s32 4294967294, %s949_s23   ;;  %s949_s23 = sphi %s994_s23, %s18_s23   ;;  %s945_s22 = sphi %s992_s22, %s1151_s22   ;;  %s941_s21 = sphi %s990_s21, %s1150_s21   ;;  %s937_s20 = sphi %s988_s20, %s1149_s20   ;;  %s933_s19 = sphi %s986_s19, %s1148_s19   ;;  %s929_s18 = sphi %s984_s18, %s1147_s18  }
   0x5   : > { %s37_s26 = sadd.s32 1, %s945_s22  ;;  %s179_s27 = sadd.s32 1, %s937_s20 }
   0x6   : > { %p39_p0 = scmp.ge.s32.totalorder %s37_s26, 2  ;;  %p189_p1 = scmp.ne.s32.totalorder %s937_s20, %s933_s19 }
   0x7   : > { %p190_p2 = scmp.eq.s32.totalorder %s782_s24, 1  ;;  %p195_p3 = scmp.ne.s32.totalorder %s933_s19, %s929_s18 }
   0x8   : > { %s1153_s26 = smov (%p39_p0, %s37_s26), 0  ;;  %p196_p5 = scmp.eq.s32.totalorder %s783_s25, 1 }
   0x9   : > { %p1024_p4 = por %p190_p2, %p189_p1  ;;  %s174_s29 = ssub.s32 %s945_s22, %s1153_s26 }
   0xa   : > { %p786_p6 = scmp.ge.s32.totalorder %s949_s23, 1  ;;  %p177_p7 = scmp.eq.s32.totalorder %s174_s29, 0 }
   0xb   : > { %p1031_p8 = por %p196_p5, %p195_p3  ;;  %p265_p9 = scmp.lt.s32.totalorder %s949_s23, 3 }
   0xc   : > { %s1037_s6 = scalar_select %p177_p7, %s937_s20, %s179_s27  }
   0xd   : > { %p266_p10 = pnand %p786_p6, %p265_p9 }
   0xe   : > { %p322_p11 = scmp.lt.s32.totalorder (!%p266_p10), %s941_s21, 1  ;;  %v951_v0 = vmov (!%p266_p10), 0   ;;  %v616_v9 = vld [vmem:[%s1143_s4] sm:$0xf] (!%p266_p10)  ;;  %v366_v10 = vlaneseq (!%p266_p10)  ;;  %v952_v19 = vmov (!%p266_p10), 839922192  }
   0xf   : > { %269 = sbr.rel (%p266_p10) target bundleno = 416 (0x1a0), region = 40  ;;  %870 = vset.pattern.permute.xlu1 (!%p266_p10), %v951_v0  ;;  %869 = vset.pattern.permute.xlu0 (!%p266_p10), %v951_v0  ;;  %v392_v20 = vunpack.c.l.s4 (!%p266_p10), %v952_v19  ;;  %vm560_vm0 = vcmask (!%p266_p10), 523264   ;;  %s318_s29 = sand.u32 (!%p266_p10), 1, %s933_s19  }
  0x10   : > { %596 = vmatprep.mubr.bf16.mxu0 (!%p266_p10), %v951_v0  ;;  %v367_v11 = vshrl.u32 (!%p266_p10), %v366_v10, 7  ;;  %s787_s9 = sshll.u32 (!%p266_p10), %s318_s29, 3  ;;  %s811_s13 = sshll.u32 (!%p266_p10), %s941_s21, 7 }
  0x11   : > { %v393_v23 = vunpack.c.0.s8 (!%p266_p10), %v392_v20  ;;  %s633_s24 = scalar_lea.sflag (!%p266_p10), [#allocation4], %s318_s29 }
  0x12   : > { %v368_v12 = vsub.s32 (!%p266_p10), 0, %v367_v11  ;;  %v372_v13 = vsub.s32 (!%p266_p10), 1, %v367_v11 }
  0x13   : > { %v1059_v26 = vsub.s32 (!%p266_p10), %v393_v23, %v367_v11 }
  0x16   : > { %s1043_s7 = scalar_select %p322_p11, %s941_s21, 1 }
  0x17   : > { %s953_s21 = smov [#allocation3]  }
  0x18   : > { %s810_s8 = sshll.u32 %s1043_s7, 5  ;;  %s790_s14 = sshll.u32 %s1043_s7, 1 }
  0x19   : > { %s348_s11 = scalar_lea.vmem %s1141_s2, %s810_s8  ;;  %s338_s17 = scalar_lea.vmem %s1140_s1, %s790_s14 }
  0x1a   : > { %v380_v1 = vld [vmem:[%s348_s11 + $0x8] sm:$0xf]  ;;  %v378_v2 = vld [vmem:[%s348_s11] sm:$0xf]  ;;  %v381_v3 = vld [vmem:[%s348_s11 + $0xc] sm:$0xf]  ;;  %s356_s27 = scalar_lea.vmem %s1142_s3, %s790_s14 }
  0x1b   : > { %412 = vperm.xlu1 %870, %v380_v1   ;;  %388 = vperm.xlu0 %869, %v378_v2   ;;  %v379_v4 = vld [vmem:[%s348_s11 + $0x4] sm:$0xf]  ;;  %v383_v5 = vld [vmem:[%s348_s11 + $0x14] sm:$0xf]  ;;  %v382_v6 = vld [vmem:[%s348_s11 + $0x10] sm:$0xf] }
  0x1c   : > { %v385_v7 = vld [vmem:[%s348_s11 + $0x1c] sm:$0xf]  ;;  %v384_v8 = vld [vmem:[%s348_s11 + $0x18] sm:$0xf]  ;;  %v364_v14 = vld [vmem:[%s338_s17] sm:$0x3]  ;;  %s1092_s17 = scalar_lea.hbm %s1144_s5, %s811_s13 }
  0x1d   : > { %v369_v15 = vrot.slane %v364_v14, %v368_v12  ;;  %v373_v16 = vrot.slane %v364_v14, %v372_v13  ;;  %s809_s8 = sshll.u32 %s1043_s7, 3  ;;  %s320_s14 = scalar_lea.vmem [#allocation3], %s787_s9 }
  0x1e   : > { %s329_s12 = scalar_lea.vmem %s1139_s0, %s809_s8  ;;  %s649_s15 = sshll.u32 %s320_s14, 4  ;;  %s1094_s15 = int_to_ptr.vmem [resolvable:$true] %s649_s15 }
  0x1f   : > { %424 = vperm.xlu1 %870, %v381_v3   ;;  %400 = vperm.xlu0 %869, %v379_v4   ;;  %v376_v17 = vpack.c.bf16 %v369_v15, %v369_v15  ;;  %v377_v18 = vpack.c.bf16 %v373_v16, %v373_v16  ;;  %v614_v11 = vld [vmem:[%s329_s12] sm:$0xff]  ;;  %s871_s25 = scalar_lea.vmem %s1094_s15, 128 }
  0x20   : > { %p872_p12 = scmp.ne.s32.totalorder %s1094_s15, %s871_s25 }
  0x21   : > { %v483_v21 = vpack.i.b16 %v376_v17, %v376_v17  ;;  %v490_v22 = vpack.i.b16 %v377_v18, %v377_v18 }
  0x22   : > { %p873_p13 = pnand %p872_p12, %p1024_p4 }
  0x23   : > { %448 = vperm.xlu1 %870, %v383_v5   ;;  %436 = vperm.xlu0 %869, %v382_v6   ;;  %v488_v24 = vrot.slane %v483_v21, %v368_v12  ;;  %v495_v25 = vrot.slane %v490_v22, %v368_v12  ;;  %v519_v5 = vld [vmem:[%s356_s27] sm:$0x3]  ;;  %s875_s27 = sshll.u32 %s953_s21, 4  ;;  %s876_s27 = int_to_ptr.vmem [resolvable:$false] %s875_s27 }
  0x24   : > { %p874_p0 = pneg %p873_p13  ;;  %s877_s8 = scalar_lea.vmem %s876_s27, 256 }
  0x25   : > { %v794_v27 = vcombine.low %v488_v24, %v495_v25  ;;  %p878_p1 = scmp.lt.s32.totalorder %s1094_s15, %s876_s27  ;;  %p879_p2 = scmp.lt.s32.totalorder %s877_s8, %s871_s25 }
  0x27   : > { %472 = vperm.xlu1 %870, %v385_v7   ;;  %460 = vperm.xlu0 %869, %v384_v8   ;;  %p880_p3 = por %p879_p2, %p878_p1 }
  0x29   : > { %p881_p5 = pnand %p880_p3, %p874_p0 }
  0x2b   : > { %619 = vperm.xlu0 %869, %v616_v9  }
  0x9a   : > { %v413_v28 = vpop.permute.xlu1 %412  ;;  %v389_v29 = vpop.permute.xlu0 %388 }
  0x9b   : > { %v421_v30 = vrot.slane %v413_v28, %v1059_v26  ;;  %v397_v31 = vrot.slane %v389_v29, %v1059_v26 }
  0x9d   : > { %v504_v32 = vadd.bf16 %v794_v27, %v421_v30  ;;  %v502_v33 = vadd.bf16 %v794_v27, %v397_v31 }
  0x9e   : > { %v425_v34 = vpop.permute.xlu1 %424  ;;  %v401_v35 = vpop.permute.xlu0 %400 }
  0x9f   : > { %v433_v36 = vrot.slane %v425_v34, %v1059_v26  ;;  %v409_v37 = vrot.slane %v401_v35, %v1059_v26  ;;  %v512_v40 = vmax.bf16 %v951_v0, %v504_v32  ;;  %v510_v43 = vmax.bf16 %v951_v0, %v502_v33 }
  0xa1   : > { %v505_v38 = vadd.bf16 %v794_v27, %v433_v36  ;;  %v503_v39 = vadd.bf16 %v794_v27, %v409_v37 }
  0xa2   : > { %v449_v41 = vpop.permute.xlu1 %448  ;;  %v437_v42 = vpop.permute.xlu0 %436 }
  0xa3   : > { %v513_v44 = vmax.bf16 %v951_v0, %v505_v38  ;;  %v457_v45 = vrot.slane %v449_v41, %v1059_v26  ;;  %v445_v46 = vrot.slane %v437_v42, %v1059_v26  ;;  %v511_v47 = vmax.bf16 %v951_v0, %v503_v39 }
  0xa5   : > { %v507_v48 = vadd.bf16 %v794_v27, %v457_v45  ;;  %v506_v49 = vadd.bf16 %v794_v27, %v445_v46  ;;  %v796_v50 = vcombine.high %v510_v43, %v511_v47  ;;  %v795_v51 = vcombine.low %v510_v43, %v511_v47 }
  0xa6   : > { %v473_v52 = vpop.permute.xlu1 %472  ;;  %v461_v53 = vpop.permute.xlu0 %460  ;;  %v798_v54 = vcombine.high %v512_v40, %v513_v44  ;;  %v797_v61 = vcombine.low %v512_v40, %v513_v44 }
  0xa7   : > { %v515_v55 = vmax.bf16 %v951_v0, %v507_v48  ;;  %v514_v56 = vmax.bf16 %v951_v0, %v506_v49  ;;  %v481_v57 = vrot.slane %v473_v52, %v1059_v26  ;;  %v469_v58 = vrot.slane %v461_v53, %v1059_v26  ;;  %564 = vmatprep.subr.bf16.mxu0 %v796_v50 }
  0xa8   : > { %565 = vmatpush1.bf16.msra.mxu0 %v795_v51 }
  0xa9   : > { %v509_v59 = vadd.bf16 %v794_v27, %v481_v57  ;;  %v508_v60 = vadd.bf16 %v794_v27, %v469_v58  ;;  %566 = vmatprep.subr.bf16.mxu0 %v798_v54  ;;  %v800_v1 = vcombine.high %v514_v56, %v515_v55  ;;  %v799_v2 = vcombine.low %v514_v56, %v515_v55 }
  0xab   : > { %v517_v62 = vmax.bf16 %v951_v0, %v509_v59  ;;  %v516_v63 = vmax.bf16 %v951_v0, %v508_v60  ;;  %v620_v0 = vpop.permute.xlu0 %619 }
  0xac   : > { %567 = vmatpush1.bf16.msra.mxu0 %v797_v61  ;;  %v627_v8 = vrot.slane %v620_v0, %v1059_v26 }
  0xad   : > { %568 = vmatprep.subr.bf16.mxu0 %v800_v1  ;;  %v802_v3 = vcombine.high %v516_v63, %v517_v62  ;;  %v801_v4 = vcombine.low %v516_v63, %v517_v62 }
  0xb0   : > { %569 = vmatpush1.bf16.msra.mxu0 %v799_v2 }
  0xb1   : > { %570 = vmatprep.subr.bf16.mxu0 %v802_v3 }
  0xb4   : > { %571 = vmatpush1.bf16.msra.mxu0 %v801_v4 }
  0xb7   : > { %803 = vmatmul.mubr.msk.bf16.vlgmr.msra.gmra.mrb[0].mxu0 %vm560_vm0, %v519_v5 }
 0x18a   : > { %v598_v6 = vpop.f32.mrb[0].mxu0 }
 0x18b   : > { %v600_v7 = vpop.f32.mrb[1].mxu0 }
 0x18c   : > { %v607_v9 = vcombine.low %v598_v6, %v600_v7  ;;  %v602_v10 = vpop.f32.mrb[2].mxu0 }
 0x18d   : > { %v603_v12 = vpop.f32.mrb[3].mxu0 }
 0x18e   : > { %v629_v13 = vadd.f32 %v627_v8, %v607_v9 }
 0x190   : > { %v630_v14 = vadd.f32 %v629_v13, %v614_v11 }
 0x192   : > { %631 = vst [vmem:[%s320_s14] sm:$0xff] %v630_v14 }
 0x193   : > { %884 = shalt.err (!%p881_p5)
}
 0x194   : > { %s885_s29 = scalar_lea.hbm %s1092_s17, 128  ;;  %s889_s11 = scalar_lea.hbm %s1144_s5, 256 }
 0x195   : > { %p886_p6 = scmp.ne.s32.totalorder %s1092_s17, %s885_s29  ;;  %p890_p10 = scmp.lt.u32.totalorder %s1092_s17, %s1144_s5 }
 0x196   : > { %p891_p11 = scmp.lt.u32.totalorder %s889_s11, %s885_s29  ;;  %p893_p13 = scmp.lt.u32.totalorder %s885_s29, %s1092_s17 }
 0x197   : > { %p887_p7 = pnand %p886_p6, %p1024_p4 }
 0x198   : > { %p892_p12 = por %p891_p11, %p890_p10 }
 0x199   : > { %p888_p9 = pneg %p887_p7 }
 0x19a   : > { %p894_p0 = por %p893_p13, %p892_p12 }
 0x19c   : > { %p895_p1 = pnand %p894_p0, %p888_p9 }
 0x19e   : > { %898 = shalt.err (!%p895_p1)
}
 0x19f   : > { %812 = dma.vmem_to_hbm [thread:$0]  (%p1024_p4), %s1094_s15, 128, %s1092_s17, %s633_s24  }
 0x1a0 PF: > { %p818_p2 = scmp.ge.s32.totalorder %s949_s23, 2  ;;  %s661_s14 = sand.u32 1, %s929_s18  }
 0x1a1   : > { %s662_s7 = scalar_lea.sflag [#allocation4], %s661_s14 }
 0x1a2   : > { %p815_p3 = pnand %p818_p2, %p1031_p8 }
 0x1a4   : > { %924 = dma.done.wait (!%p815_p3), %s662_s7, 128  }
 0x1a5   : > { %926 = vsyncadd (!%p815_p3), %s662_s7, 4294967168  ;;  %s18_s23 = sadd.s32 1, %s949_s23   ;;  %s1147_s18 = smov %s933_s19 }
 0x1a6   : > { %p15_p5 = scmp.ge.s32.totalorder %s18_s23, 4   ;;  %s1148_s19 = smov %s937_s20 }
 0x1a7   : > { %s1149_s20 = smov %s1037_s6  ;;  %s1150_s21 = smov %s945_s22 }
 0x1a8   : > { %s1151_s22 = smov %s1153_s26  ;;  %17 = sbr.rel (!%p15_p5) target bundleno = 4 (0x4), region = 92 }
 0x1af   :  { %667 = vsyncpa [#allocation4], 1 }
 0x1b0   :  { %669 = vsyncpa [#allocation4 + $0x1], 1 }

// kernel: tpu_custom_call.1
= control target key start
LH: loop header
LB: loop body
LE: loop exit
PB: predicated region body
PF: predicated region fallthrough
CT: control target
= control target key end

     0   :  { %10 = vsyncpa [#allocation4], 0  ;;  %s1133_s0 = inlined_call_operand.vmem [shape: f32[2,4,256], index: 0, kind: input, shape index: {}]   ;;  %s1134_s1 = inlined_call_operand.vmem [shape: f32[2,1,256], index: 1, kind: input, shape index: {}]   ;;  %s1135_s2 = inlined_call_operand.vmem [shape: bf16[2,64,1], index: 2, kind: input, shape index: {}]   ;;  %s1136_s3 = inlined_call_operand.vmem [shape: bf16[2,4,64], index: 3, kind: input, shape index: {}]   ;;  %s1137_s4 = inlined_call_operand.vmem [shape: f32[4,1], index: 4, kind: input, shape index: {}]   ;;  %s1138_s5 = inlined_call_operand.hbm [shape: f32[2,4,256], index: 5, kind: output, shape index: {}]  }
   0x1   :  { %12 = vsyncpa [#allocation4 + $0x1], 0  ;;  %s978_s18 = smov 0   ;;  %s980_s19 = smov 0  }
   0x2   :  { %s982_s20 = smov 0   ;;  %s984_s21 = smov 0  }
   0x3   :  { %s986_s22 = smov 0   ;;  %s988_s23 = smov 0  }
   0x4 LB: > { %s776_s24 = sadd.s32 4294967295, %s943_s23   ;;  %s777_s25 = sadd.s32 4294967294, %s943_s23   ;;  %s943_s23 = sphi %s988_s23, %s18_s23   ;;  %s939_s22 = sphi %s986_s22, %s1145_s22   ;;  %s935_s21 = sphi %s984_s21, %s1144_s21   ;;  %s931_s20 = sphi %s982_s20, %s1143_s20   ;;  %s927_s19 = sphi %s980_s19, %s1142_s19   ;;  %s923_s18 = sphi %s978_s18, %s1141_s18  }
   0x5   : > { %s37_s26 = sadd.s32 1, %s939_s22  ;;  %s179_s27 = sadd.s32 1, %s931_s20 }
   0x6   : > { %p39_p0 = scmp.ge.s32.totalorder %s37_s26, 2  ;;  %p189_p1 = scmp.ne.s32.totalorder %s931_s20, %s927_s19 }
   0x7   : > { %p190_p2 = scmp.eq.s32.totalorder %s776_s24, 1  ;;  %p195_p3 = scmp.ne.s32.totalorder %s927_s19, %s923_s18 }
   0x8   : > { %s1147_s26 = smov (%p39_p0, %s37_s26), 0  ;;  %p196_p5 = scmp.eq.s32.totalorder %s777_s25, 1 }
   0x9   : > { %p1018_p4 = por %p190_p2, %p189_p1  ;;  %s174_s29 = ssub.s32 %s939_s22, %s1147_s26 }
   0xa   : > { %p780_p6 = scmp.ge.s32.totalorder %s943_s23, 1  ;;  %p177_p7 = scmp.eq.s32.totalorder %s174_s29, 0 }
   0xb   : > { %p1025_p8 = por %p196_p5, %p195_p3  ;;  %p265_p9 = scmp.lt.s32.totalorder %s943_s23, 3 }
   0xc   : > { %s1031_s6 = scalar_select %p177_p7, %s931_s20, %s179_s27  }
   0xd   : > { %p266_p10 = pnand %p780_p6, %p265_p9 }
   0xe   : > { %p322_p11 = scmp.lt.s32.totalorder (!%p266_p10), %s935_s21, 1  ;;  %v945_v0 = vmov (!%p266_p10), 0   ;;  %v616_v9 = vld [vmem:[%s1137_s4] sm:$0xf] (!%p266_p10)  ;;  %v366_v10 = vlaneseq (!%p266_p10)  ;;  %v946_v19 = vmov (!%p266_p10), 839922192  }
   0xf   : > { %269 = sbr.rel (%p266_p10) target bundleno = 416 (0x1a0), region = 40  ;;  %864 = vset.pattern.permute.xlu1 (!%p266_p10), %v945_v0  ;;  %863 = vset.pattern.permute.xlu0 (!%p266_p10), %v945_v0  ;;  %v392_v20 = vunpack.c.l.s4 (!%p266_p10), %v946_v19  ;;  %vm560_vm0 = vcmask (!%p266_p10), 523264   ;;  %s318_s29 = sand.u32 (!%p266_p10), 1, %s927_s19  }
  0x10   : > { %596 = vmatprep.mubr.bf16.mxu0 (!%p266_p10), %v945_v0  ;;  %v367_v11 = vshrl.u32 (!%p266_p10), %v366_v10, 7  ;;  %s781_s9 = sshll.u32 (!%p266_p10), %s318_s29, 3  ;;  %s805_s13 = sshll.u32 (!%p266_p10), %s935_s21, 7 }
  0x11   : > { %v393_v23 = vunpack.c.0.s8 (!%p266_p10), %v392_v20  ;;  %s633_s24 = scalar_lea.sflag (!%p266_p10), [#allocation4], %s318_s29 }
  0x12   : > { %v368_v12 = vsub.s32 (!%p266_p10), 0, %v367_v11  ;;  %v372_v13 = vsub.s32 (!%p266_p10), 1, %v367_v11 }
  0x13   : > { %v1053_v26 = vsub.s32 (!%p266_p10), %v393_v23, %v367_v11 }
  0x16   : > { %s1037_s7 = scalar_select %p322_p11, %s935_s21, 1 }
  0x17   : > { %s947_s21 = smov [#allocation3]  }
  0x18   : > { %s804_s8 = sshll.u32 %s1037_s7, 5  ;;  %s784_s14 = sshll.u32 %s1037_s7, 1 }
  0x19   : > { %s348_s11 = scalar_lea.vmem %s1135_s2, %s804_s8  ;;  %s338_s17 = scalar_lea.vmem %s1134_s1, %s784_s14 }
  0x1a   : > { %v380_v1 = vld [vmem:[%s348_s11 + $0x8] sm:$0xf]  ;;  %v378_v2 = vld [vmem:[%s348_s11] sm:$0xf]  ;;  %v381_v3 = vld [vmem:[%s348_s11 + $0xc] sm:$0xf]  ;;  %s356_s27 = scalar_lea.vmem %s1136_s3, %s784_s14 }
  0x1b   : > { %412 = vperm.xlu1 %864, %v380_v1   ;;  %388 = vperm.xlu0 %863, %v378_v2   ;;  %v379_v4 = vld [vmem:[%s348_s11 + $0x4] sm:$0xf]  ;;  %v383_v5 = vld [vmem:[%s348_s11 + $0x14] sm:$0xf]  ;;  %v382_v6 = vld [vmem:[%s348_s11 + $0x10] sm:$0xf] }
  0x1c   : > { %v385_v7 = vld [vmem:[%s348_s11 + $0x1c] sm:$0xf]  ;;  %v384_v8 = vld [vmem:[%s348_s11 + $0x18] sm:$0xf]  ;;  %v364_v14 = vld [vmem:[%s338_s17] sm:$0x3]  ;;  %s1086_s17 = scalar_lea.hbm %s1138_s5, %s805_s13 }
  0x1d   : > { %v369_v15 = vrot.slane %v364_v14, %v368_v12  ;;  %v373_v16 = vrot.slane %v364_v14, %v372_v13  ;;  %s803_s8 = sshll.u32 %s1037_s7, 3  ;;  %s320_s14 = scalar_lea.vmem [#allocation3], %s781_s9 }
  0x1e   : > { %s329_s12 = scalar_lea.vmem %s1133_s0, %s803_s8  ;;  %s649_s15 = sshll.u32 %s320_s14, 4  ;;  %s1088_s15 = int_to_ptr.vmem [resolvable:$true] %s649_s15 }
  0x1f   : > { %424 = vperm.xlu1 %864, %v381_v3   ;;  %400 = vperm.xlu0 %863, %v379_v4   ;;  %v376_v17 = vpack.c.bf16 %v369_v15, %v369_v15  ;;  %v377_v18 = vpack.c.bf16 %v373_v16, %v373_v16  ;;  %v614_v11 = vld [vmem:[%s329_s12] sm:$0xff]  ;;  %s865_s25 = scalar_lea.vmem %s1088_s15, 128 }
  0x20   : > { %p866_p12 = scmp.ne.s32.totalorder %s1088_s15, %s865_s25 }
  0x21   : > { %v483_v21 = vpack.i.b16 %v376_v17, %v376_v17  ;;  %v490_v22 = vpack.i.b16 %v377_v18, %v377_v18 }
  0x22   : > { %p867_p13 = pnand %p866_p12, %p1018_p4 }
  0x23   : > { %448 = vperm.xlu1 %864, %v383_v5   ;;  %436 = vperm.xlu0 %863, %v382_v6   ;;  %v488_v24 = vrot.slane %v483_v21, %v368_v12  ;;  %v495_v25 = vrot.slane %v490_v22, %v368_v12  ;;  %v519_v5 = vld [vmem:[%s356_s27] sm:$0x3]  ;;  %s869_s27 = sshll.u32 %s947_s21, 4  ;;  %s870_s27 = int_to_ptr.vmem [resolvable:$false] %s869_s27 }
  0x24   : > { %p868_p0 = pneg %p867_p13  ;;  %s871_s8 = scalar_lea.vmem %s870_s27, 256 }
  0x25   : > { %v788_v27 = vcombine.low %v488_v24, %v495_v25  ;;  %p872_p1 = scmp.lt.s32.totalorder %s1088_s15, %s870_s27  ;;  %p873_p2 = scmp.lt.s32.totalorder %s871_s8, %s865_s25 }
  0x27   : > { %472 = vperm.xlu1 %864, %v385_v7   ;;  %460 = vperm.xlu0 %863, %v384_v8   ;;  %p874_p3 = por %p873_p2, %p872_p1 }
  0x29   : > { %p875_p5 = pnand %p874_p3, %p868_p0 }
  0x2b   : > { %619 = vperm.xlu0 %863, %v616_v9  }
  0x9a   : > { %v413_v28 = vpop.permute.xlu1 %412  ;;  %v389_v29 = vpop.permute.xlu0 %388 }
  0x9b   : > { %v421_v30 = vrot.slane %v413_v28, %v1053_v26  ;;  %v397_v31 = vrot.slane %v389_v29, %v1053_v26 }
  0x9d   : > { %v504_v32 = vadd.bf16 %v788_v27, %v421_v30  ;;  %v502_v33 = vadd.bf16 %v788_v27, %v397_v31 }
  0x9e   : > { %v425_v34 = vpop.permute.xlu1 %424  ;;  %v401_v35 = vpop.permute.xlu0 %400 }
  0x9f   : > { %v433_v36 = vrot.slane %v425_v34, %v1053_v26  ;;  %v409_v37 = vrot.slane %v401_v35, %v1053_v26  ;;  %v512_v40 = vmax.bf16 %v945_v0, %v504_v32  ;;  %v510_v43 = vmax.bf16 %v945_v0, %v502_v33 }
  0xa1   : > { %v505_v38 = vadd.bf16 %v788_v27, %v433_v36  ;;  %v503_v39 = vadd.bf16 %v788_v27, %v409_v37 }
  0xa2   : > { %v449_v41 = vpop.permute.xlu1 %448  ;;  %v437_v42 = vpop.permute.xlu0 %436 }
  0xa3   : > { %v513_v44 = vmax.bf16 %v945_v0, %v505_v38  ;;  %v457_v45 = vrot.slane %v449_v41, %v1053_v26  ;;  %v445_v46 = vrot.slane %v437_v42, %v1053_v26  ;;  %v511_v47 = vmax.bf16 %v945_v0, %v503_v39 }
  0xa5   : > { %v507_v48 = vadd.bf16 %v788_v27, %v457_v45  ;;  %v506_v49 = vadd.bf16 %v788_v27, %v445_v46  ;;  %v790_v50 = vcombine.high %v510_v43, %v511_v47  ;;  %v789_v51 = vcombine.low %v510_v43, %v511_v47 }
  0xa6   : > { %v473_v52 = vpop.permute.xlu1 %472  ;;  %v461_v53 = vpop.permute.xlu0 %460  ;;  %v792_v54 = vcombine.high %v512_v40, %v513_v44  ;;  %v791_v61 = vcombine.low %v512_v40, %v513_v44 }
  0xa7   : > { %v515_v55 = vmax.bf16 %v945_v0, %v507_v48  ;;  %v514_v56 = vmax.bf16 %v945_v0, %v506_v49  ;;  %v481_v57 = vrot.slane %v473_v52, %v1053_v26  ;;  %v469_v58 = vrot.slane %v461_v53, %v1053_v26  ;;  %564 = vmatprep.subr.bf16.mxu0 %v790_v50 }
  0xa8   : > { %565 = vmatpush1.bf16.msra.mxu0 %v789_v51 }
  0xa9   : > { %v509_v59 = vadd.bf16 %v788_v27, %v481_v57  ;;  %v508_v60 = vadd.bf16 %v788_v27, %v469_v58  ;;  %566 = vmatprep.subr.bf16.mxu0 %v792_v54  ;;  %v794_v1 = vcombine.high %v514_v56, %v515_v55  ;;  %v793_v2 = vcombine.low %v514_v56, %v515_v55 }
  0xab   : > { %v517_v62 = vmax.bf16 %v945_v0, %v509_v59  ;;  %v516_v63 = vmax.bf16 %v945_v0, %v508_v60  ;;  %v620_v0 = vpop.permute.xlu0 %619 }
  0xac   : > { %567 = vmatpush1.bf16.msra.mxu0 %v791_v61  ;;  %v627_v8 = vrot.slane %v620_v0, %v1053_v26 }
  0xad   : > { %568 = vmatprep.subr.bf16.mxu0 %v794_v1  ;;  %v796_v3 = vcombine.high %v516_v63, %v517_v62  ;;  %v795_v4 = vcombine.low %v516_v63, %v517_v62 }
  0xb0   : > { %569 = vmatpush1.bf16.msra.mxu0 %v793_v2 }
  0xb1   : > { %570 = vmatprep.subr.bf16.mxu0 %v796_v3 }
  0xb4   : > { %571 = vmatpush1.bf16.msra.mxu0 %v795_v4 }
  0xb7   : > { %797 = vmatmul.mubr.msk.bf16.vlgmr.msra.gmra.mrb[0].mxu0 %vm560_vm0, %v519_v5 }
 0x18a   : > { %v598_v6 = vpop.f32.mrb[0].mxu0 }
 0x18b   : > { %v600_v7 = vpop.f32.mrb[1].mxu0 }
 0x18c   : > { %v607_v9 = vcombine.low %v598_v6, %v600_v7  ;;  %v602_v10 = vpop.f32.mrb[2].mxu0 }
 0x18d   : > { %v603_v12 = vpop.f32.mrb[3].mxu0 }
 0x18e   : > { %v629_v13 = vadd.f32 %v627_v8, %v607_v9 }
 0x190   : > { %v630_v14 = vadd.f32 %v629_v13, %v614_v11 }
 0x192   : > { %631 = vst [vmem:[%s320_s14] sm:$0xff] %v630_v14 }
 0x193   : > { %878 = shalt.err (!%p875_p5)
}
 0x194   : > { %s879_s29 = scalar_lea.hbm %s1086_s17, 128  ;;  %s883_s11 = scalar_lea.hbm %s1138_s5, 256 }
 0x195   : > { %p880_p6 = scmp.ne.s32.totalorder %s1086_s17, %s879_s29  ;;  %p884_p10 = scmp.lt.u32.totalorder %s1086_s17, %s1138_s5 }
 0x196   : > { %p885_p11 = scmp.lt.u32.totalorder %s883_s11, %s879_s29  ;;  %p887_p13 = scmp.lt.u32.totalorder %s879_s29, %s1086_s17 }
 0x197   : > { %p881_p7 = pnand %p880_p6, %p1018_p4 }
 0x198   : > { %p886_p12 = por %p885_p11, %p884_p10 }
 0x199   : > { %p882_p9 = pneg %p881_p7 }
 0x19a   : > { %p888_p0 = por %p887_p13, %p886_p12 }
 0x19c   : > { %p889_p1 = pnand %p888_p0, %p882_p9 }
 0x19e   : > { %892 = shalt.err (!%p889_p1)
}
 0x19f   : > { %806 = dma.vmem_to_hbm [thread:$0]  (%p1018_p4), %s1088_s15, 128, %s1086_s17, %s633_s24  }
 0x1a0 PF: > { %p812_p2 = scmp.ge.s32.totalorder %s943_s23, 2  ;;  %s661_s14 = sand.u32 1, %s923_s18  }
 0x1a1   : > { %s662_s7 = scalar_lea.sflag [#allocation4], %s661_s14 }
 0x1a2   : > { %p809_p3 = pnand %p812_p2, %p1025_p8 }
 0x1a4   : > { %918 = dma.done.wait (!%p809_p3), %s662_s7, 128  }
 0x1a5   : > { %920 = vsyncadd (!%p809_p3), %s662_s7, 4294967168  ;;  %s18_s23 = sadd.s32 1, %s943_s23   ;;  %s1141_s18 = smov %s927_s19 }
 0x1a6   : > { %p15_p5 = scmp.ge.s32.totalorder %s18_s23, 4   ;;  %s1142_s19 = smov %s931_s20 }
 0x1a7   : > { %s1143_s20 = smov %s1031_s6  ;;  %s1144_s21 = smov %s939_s22 }
 0x1a8   : > { %s1145_s22 = smov %s1147_s26  ;;  %17 = sbr.rel (!%p15_p5) target bundleno = 4 (0x4), region = 92 }
 0x1af   :  { %667 = vsyncpa [#allocation4], 1 }
 0x1b0   :  { %669 = vsyncpa [#allocation4 + $0x1], 1 }

</bundles_post_ra>
